<compile_context>
chip_gen: v7x
topology: tpu7x:2x2x1
jax: 0.10.0
libtpu: 0.0.40
codegen_flags: <defaults>
</compile_context>

<pallas_src>
import functools

import jax
import jax.numpy as jnp
from jax.experimental import pallas as pl
from jax.experimental.pallas import tpu as pltpu


def _se_block_kernel(x_ref, w1_ref, w2_ref, o_ref, *, block_b, inv_hw):
    # x_ref / o_ref: (block_b, C, HW_pad); w1_ref: (C//r, C); w2_ref: (C, C//r)
    w1 = w1_ref[...].astype(jnp.float32)
    w2 = w2_ref[...].astype(jnp.float32)

    for b in range(block_b):
        # 1) Global average pool over the (zero-padded) spatial lanes.
        #    f32 accumulation without materializing an f32 copy of the block;
        #    dividing by the true HW makes the zero padding exact.
        y = jnp.sum(x_ref[b], axis=-1, keepdims=True,
                    dtype=jnp.float32) * inv_hw                       # (C, 1)

        # 2) Excite MLP with PyTorch (out, in) weights; channels stay on
        #    sublanes so the result broadcasts over spatial lanes directly.
        h = jnp.dot(w1, y, preferred_element_type=jnp.float32)        # (CR, 1)
        h = jnp.maximum(h, 0.0)
        s = jnp.dot(w2, h, preferred_element_type=jnp.float32)        # (C, 1)
        s = jax.nn.sigmoid(s)

        # 3) Per-channel rescale in the INPUT dtype (bf16 stays bf16 on
        #    v6e/v7x; v5e widens internally).  x is re-read from VMEM, so no
        #    long f32 live range crosses the pool -> MLP -> rescale phases.
        o_ref[b] = x_ref[b] * s.astype(o_ref.dtype)


def _vmem_capacity_bytes():
    try:
        return int(pltpu.get_tpu_info().vmem_capacity_bytes)
    except Exception:
        return 64 * 1024 * 1024  # conservative default (v7x per-TC VMEM)


def _pick_block_b(b, c, hw_pad, itemsize, *, vmem_budget_bytes):
    """Batch sub-block size: ~2 MiB blocks, >=8 grid steps when B allows, and a
    single grid step for tiny problems (avoids per-step overhead)."""
    per_batch = c * hw_pad * itemsize
    total = b * per_batch
    target = min(2 * 1024 * 1024, max(per_batch, vmem_budget_bytes // 8))
    if total <= target:
        return b                       # tiny problem: one grid step
    bb = max(1, min(b, target // per_batch))
    min_steps = 8                      # >=4 steps per v7x TC; >=8 on 1-TC chips
    if b >= min_steps:
        bb = min(bb, b // min_steps)
    bb = max(bb, 1)
    while b % bb:                      # must divide B
        bb -= 1
    return bb


def se_block(x_nchw, w1, w2, *, block_b=None):
    """Squeeze-and-Excitation forward.

    x_nchw: (B, C, H, W), float32 or bfloat16.
    w1: (C//r, C)  -- PyTorch fc1.weight layout (out, in), no bias.
    w2: (C, C//r)  -- PyTorch fc2.weight layout (out, in), no bias.
    """
    b, c, h, w = x_nchw.shape
    hw = h * w
    cr, c_in = w1.shape
    assert c_in == c and w2.shape == (c, cr)

    # Lane-dense spatial axis: pad flattened H*W up to a multiple of 128 so
    # output stores are unmasked; padding zeros don't affect the pooled sum.
    hw_pad = ((hw + 127) // 128) * 128
    x = x_nchw.reshape(b, c, hw)
    if hw_pad != hw:
        x = jnp.pad(x, ((0, 0), (0, 0), (0, hw_pad - hw)))

    itemsize = jnp.dtype(x.dtype).itemsize
    vmem_cap = _vmem_capacity_bytes()
    vmem_budget = vmem_cap // 3
    if block_b is None:
        block_b = _pick_block_b(b, c, hw_pad, itemsize,
                                vmem_budget_bytes=vmem_budget)
    assert b % block_b == 0
    grid = (b // block_b,)

    # VMEM accounting: double-buffered in + out blocks (input dtype), both
    # weight tiles double-buffered, small per-b f32 intermediates + headroom.
    block_bytes = block_b * c * hw_pad * itemsize
    w_bytes = 2 * cr * c * jnp.dtype(w1.dtype).itemsize
    vmem_limit = 4 * block_bytes + 4 * w_bytes + (2 << 20)
    vmem_limit = int(min(max(vmem_limit, 4 << 20), (vmem_cap * 9) // 10))

    kernel = functools.partial(_se_block_kernel, block_b=block_b,
                               inv_hw=1.0 / float(hw))
    out = pl.pallas_call(
        kernel,
        out_shape=jax.ShapeDtypeStruct((b, c, hw_pad), x.dtype),
        grid_spec=pltpu.PrefetchScalarGridSpec(
            num_scalar_prefetch=0,
            grid=grid,
            in_specs=[
                pl.BlockSpec((block_b, c, hw_pad), lambda i: (i, 0, 0)),
                pl.BlockSpec((cr, c), lambda i: (0, 0)),
                pl.BlockSpec((c, cr), lambda i: (0, 0)),
            ],
            out_specs=pl.BlockSpec((block_b, c, hw_pad), lambda i: (i, 0, 0)),
        ),
        compiler_params=pltpu.CompilerParams(
            dimension_semantics=("parallel",),
            vmem_limit_bytes=vmem_limit),
    )(x, w1, w2)

    if hw_pad != hw:
        out = out[:, :, :hw]
    return out.reshape(b, c, h, w)


def se_block_ref(x, w1, w2):
    # Pure-JAX reference matching the PyTorch forward ((out, in) weight layout).
    y = jnp.mean(x, axis=(2, 3))                       # (B, C)
    y = jnp.maximum(y @ w1.T, 0.0)                     # (B, C//r)
    y = jax.nn.sigmoid(y @ w2.T)                       # (B, C)
    return x * y[:, :, None, None]


if __name__ == "__main__":
    key = jax.random.PRNGKey(0)
    k_x, k_w1, k_w2 = jax.random.split(key, 3)

    # Module config: inchannel=64, ratio=16 -> hidden = 4.
    B, C, H, W = 2, 64, 16, 16
    RATIO = 16
    CR = C // RATIO

    x = jax.random.normal(k_x, (B, C, H, W), dtype=jnp.float32)
    # PyTorch nn.Linear stores weight as (out_features, in_features).
    w1 = jax.random.normal(k_w1, (CR, C), dtype=jnp.float32) * 0.1   # fc1.weight
    w2 = jax.random.normal(k_w2, (C, CR), dtype=jnp.float32) * 0.1   # fc2.weight

    # Tiny shape -> auto block sizing collapses to a single grid step.
    out = jax.block_until_ready(se_block(x, w1, w2))
    ref = se_block_ref(x, w1, w2)
    assert out.shape == (B, C, H, W)
    assert jnp.allclose(out, ref, atol=1e-5, rtol=1e-5), "f32 mismatch vs reference"

    # Forced multi-step path (grid=(4,)) to exercise the pipelined tiling.
    x4 = jax.random.normal(k_x, (4, C, H, W), dtype=jnp.float32)
    out4 = jax.block_until_ready(se_block(x4, w1, w2, block_b=1))
    ref4 = se_block_ref(x4, w1, w2)
    assert jnp.allclose(out4, ref4, atol=1e-5, rtol=1e-5), "tiled mismatch vs reference"

    # Non-multiple-of-128 spatial (7x7 = 49) -> lane-padding path.
    x7 = jax.random.normal(k_x, (2, C, 7, 7), dtype=jnp.float32)
    out7 = jax.block_until_ready(se_block(x7, w1, w2))
    ref7 = se_block_ref(x7, w1, w2)
    assert jnp.allclose(out7, ref7, atol=1e-5, rtol=1e-5), "padded-HW mismatch vs reference"

    # bf16 activations: pooling/MLP accumulate in f32, rescale multiply in bf16.
    x_bf16 = x.astype(jnp.bfloat16)
    out_bf16 = jax.block_until_ready(se_block(x_bf16, w1, w2))
    ref_bf16 = se_block_ref(x_bf16.astype(jnp.float32), w1, w2)
    assert out_bf16.dtype == jnp.bfloat16
    assert jnp.allclose(out_bf16.astype(jnp.float32), ref_bf16, atol=6e-2, rtol=6e-2), \
        "bf16 mismatch vs reference"

    print("KERNEL_OK")
</pallas_src>

<mosaic_0001>
module attributes {stable_mosaic.version = 11 : i64} {
  func.func @_se_block_kernel(%arg0: i32, %arg1: memref<2x64x256xf32, #tpu.memory_space<vmem>>, %arg2: memref<4x64xf32, #tpu.memory_space<vmem>>, %arg3: memref<64x4xf32, #tpu.memory_space<vmem>>, %arg4: memref<2x64x256xf32, #tpu.memory_space<vmem>>) attributes {dimension_semantics = [#tpu.dimension_semantics<parallel>], iteration_bounds = array<i64: 1>, scalar_prefetch = 0 : i64, scratch_operands = 0 : i64, tpu.core_type = #tpu.core_type<tc>, window_params = [{transform_indices = @transform_0, window_bounds = array<i64: 2, 64, 256>}, {pipeline_mode = #tpu.pipeline_mode<synchronous>, transform_indices = @transform_1, window_bounds = array<i64: 4, 64>}, {pipeline_mode = #tpu.pipeline_mode<synchronous>, transform_indices = @transform_2, window_bounds = array<i64: 64, 4>}, {transform_indices = @transform_3, window_bounds = array<i64: 2, 64, 256>}]} {
    %c0 = arith.constant 0 : index
    %c0_0 = arith.constant 0 : index
    %0 = vector.load %arg2[%c0, %c0_0] : memref<4x64xf32, #tpu.memory_space<vmem>>, vector<4x64xf32>
    %c0_1 = arith.constant 0 : index
    %c0_2 = arith.constant 0 : index
    %1 = vector.load %arg3[%c0_1, %c0_2] : memref<64x4xf32, #tpu.memory_space<vmem>>, vector<64x4xf32>
    %c0_3 = arith.constant 0 : index
    %c0_4 = arith.constant 0 : index
    %c0_5 = arith.constant 0 : index
    %2 = vector.load %arg1[%c0_3, %c0_4, %c0_5] : memref<2x64x256xf32, #tpu.memory_space<vmem>>, vector<1x64x256xf32>
    %3 = vector.shape_cast %2 : vector<1x64x256xf32> to vector<64x256xf32>
    %cst = arith.constant dense<0.000000e+00> : vector<64xf32>
    %4 = vector.multi_reduction <add>, %3, %cst [1] : vector<64x256xf32> to vector<64xf32>
    %5 = vector.shape_cast %4 : vector<64xf32> to vector<64x1xf32>
    %cst_6 = arith.constant 3.906250e-03 : f32
    %6 = vector.broadcast %cst_6 : f32 to vector<64x1xf32>
    %7 = arith.mulf %5, %6 : vector<64x1xf32>
    %cst_7 = arith.constant dense<0.000000e+00> : vector<4x1xf32>
    %8 = tpu.matmul %0, %7, %cst_7 {dimension_numbers = #tpu.dot_dimension_numbers<[1], [0], [0], [1], [0, 0, 1, 1], [], []>} : vector<4x64xf32>, vector<64x1xf32>, vector<4x1xf32> -> vector<4x1xf32>
    %cst_8 = arith.constant 0.000000e+00 : f32
    %9 = vector.broadcast %cst_8 : f32 to vector<4x1xf32>
    %10 = arith.maximumf %8, %9 : vector<4x1xf32>
    %cst_9 = arith.constant dense<0.000000e+00> : vector<64x1xf32>
    %11 = tpu.matmul %1, %10, %cst_9 {dimension_numbers = #tpu.dot_dimension_numbers<[1], [0], [0], [1], [0, 0, 1, 1], [], []>} : vector<64x4xf32>, vector<4x1xf32>, vector<64x1xf32> -> vector<64x1xf32>
    %12 = arith.negf %11 : vector<64x1xf32>
    %13 = math.exp %12 : vector<64x1xf32>
    %cst_10 = arith.constant 1.000000e+00 : f32
    %14 = vector.broadcast %cst_10 : f32 to vector<64x1xf32>
    %15 = arith.addf %14, %13 : vector<64x1xf32>
    %16 = arith.divf %14, %15 : vector<64x1xf32>
    %c0_11 = arith.constant 0 : index
    %c0_12 = arith.constant 0 : index
    %c0_13 = arith.constant 0 : index
    %17 = vector.load %arg1[%c0_11, %c0_12, %c0_13] : memref<2x64x256xf32, #tpu.memory_space<vmem>>, vector<1x64x256xf32>
    %18 = vector.shape_cast %17 : vector<1x64x256xf32> to vector<64x256xf32>
    %19 = vector.broadcast %16 : vector<64x1xf32> to vector<64x256xf32>
    %20 = arith.mulf %18, %19 : vector<64x256xf32>
    %c0_14 = arith.constant 0 : index
    %c0_15 = arith.constant 0 : index
    %c0_16 = arith.constant 0 : index
    %21 = vector.load %arg4[%c0_14, %c0_15, %c0_16] : memref<2x64x256xf32, #tpu.memory_space<vmem>>, vector<1x64x256xf32>
    %22 = vector.shape_cast %21 : vector<1x64x256xf32> to vector<64x256xf32>
    %23 = vector.shape_cast %20 : vector<64x256xf32> to vector<1x64x256xf32>
    tpu.vector_store %arg4[%c0_14, %c0_15, %c0_16], %23 {strides = array<i32>} : memref<2x64x256xf32, #tpu.memory_space<vmem>>, vector<1x64x256xf32>,
    %c1 = arith.constant 1 : index
    %c0_17 = arith.constant 0 : index
    %c0_18 = arith.constant 0 : index
    %24 = vector.load %arg1[%c1, %c0_17, %c0_18] : memref<2x64x256xf32, #tpu.memory_space<vmem>>, vector<1x64x256xf32>
    %25 = vector.shape_cast %24 : vector<1x64x256xf32> to vector<64x256xf32>
    %cst_19 = arith.constant dense<0.000000e+00> : vector<64xf32>
    %26 = vector.multi_reduction <add>, %25, %cst_19 [1] : vector<64x256xf32> to vector<64xf32>
    %27 = vector.shape_cast %26 : vector<64xf32> to vector<64x1xf32>
    %cst_20 = arith.constant 3.906250e-03 : f32
    %28 = vector.broadcast %cst_20 : f32 to vector<64x1xf32>
    %29 = arith.mulf %27, %28 : vector<64x1xf32>
    %cst_21 = arith.constant dense<0.000000e+00> : vector<4x1xf32>
    %30 = tpu.matmul %0, %29, %cst_21 {dimension_numbers = #tpu.dot_dimension_numbers<[1], [0], [0], [1], [0, 0, 1, 1], [], []>} : vector<4x64xf32>, vector<64x1xf32>, vector<4x1xf32> -> vector<4x1xf32>
    %cst_22 = arith.constant 0.000000e+00 : f32
    %31 = vector.broadcast %cst_22 : f32 to vector<4x1xf32>
    %32 = arith.maximumf %30, %31 : vector<4x1xf32>
    %cst_23 = arith.constant dense<0.000000e+00> : vector<64x1xf32>
    %33 = tpu.matmul %1, %32, %cst_23 {dimension_numbers = #tpu.dot_dimension_numbers<[1], [0], [0], [1], [0, 0, 1, 1], [], []>} : vector<64x4xf32>, vector<4x1xf32>, vector<64x1xf32> -> vector<64x1xf32>
    %34 = arith.negf %33 : vector<64x1xf32>
    %35 = math.exp %34 : vector<64x1xf32>
    %cst_24 = arith.constant 1.000000e+00 : f32
    %36 = vector.broadcast %cst_24 : f32 to vector<64x1xf32>
    %37 = arith.addf %36, %35 : vector<64x1xf32>
    %38 = arith.divf %36, %37 : vector<64x1xf32>
    %c1_25 = arith.constant 1 : index
    %c0_26 = arith.constant 0 : index
    %c0_27 = arith.constant 0 : index
    %39 = vector.load %arg1[%c1_25, %c0_26, %c0_27] : memref<2x64x256xf32, #tpu.memory_space<vmem>>, vector<1x64x256xf32>
    %40 = vector.shape_cast %39 : vector<1x64x256xf32> to vector<64x256xf32>
    %41 = vector.broadcast %38 : vector<64x1xf32> to vector<64x256xf32>
    %42 = arith.mulf %40, %41 : vector<64x256xf32>
    %c1_28 = arith.constant 1 : index
    %c0_29 = arith.constant 0 : index
    %c0_30 = arith.constant 0 : index
    %43 = vector.load %arg4[%c1_28, %c0_29, %c0_30] : memref<2x64x256xf32, #tpu.memory_space<vmem>>, vector<1x64x256xf32>
    %44 = vector.shape_cast %43 : vector<1x64x256xf32> to vector<64x256xf32>
    %45 = vector.shape_cast %42 : vector<64x256xf32> to vector<1x64x256xf32>
    tpu.vector_store %arg4[%c1_28, %c0_29, %c0_30], %45 {strides = array<i32>} : memref<2x64x256xf32, #tpu.memory_space<vmem>>, vector<1x64x256xf32>,
    return
  }
  func.func @transform_0(%arg0: i32) -> (i32, i32, i32) {
    %c0_i32 = arith.constant 0 : i32
    %c0_i32_0 = arith.constant 0 : i32
    %c0_i32_1 = arith.constant 0 : i32
    return %arg0, %c0_i32, %c0_i32_0 : i32, i32, i32
  }
  func.func @transform_1(%arg0: i32) -> (i32, i32) {
    %c0_i32 = arith.constant 0 : i32
    %c0_i32_0 = arith.constant 0 : i32
    %c0_i32_1 = arith.constant 0 : i32
    return %c0_i32, %c0_i32_0 : i32, i32
  }
  func.func @transform_2(%arg0: i32) -> (i32, i32) {
    %c0_i32 = arith.constant 0 : i32
    %c0_i32_0 = arith.constant 0 : i32
    %c0_i32_1 = arith.constant 0 : i32
    return %c0_i32, %c0_i32_0 : i32, i32
  }
  func.func @transform_3(%arg0: i32) -> (i32, i32, i32) {
    %c0_i32 = arith.constant 0 : i32
    %c0_i32_0 = arith.constant 0 : i32
    %c0_i32_1 = arith.constant 0 : i32
    return %arg0, %c0_i32, %c0_i32_0 : i32, i32, i32
  }
}

</mosaic_0001>

<bundles_post_ra>
// kernel: tpu_custom_call.1
= control target key start
LH: loop header
LB: loop body
LE: loop exit
PB: predicated region body
PF: predicated region fallthrough
CT: control target
= control target key end

     0   :  { %8 = vsyncpa [#allocation3], 0  ;;  %s1336_s0 = inlined_call_operand.hbm [shape: f32[2,64,256], index: 0, kind: input, shape index: {}]   ;;  %s1337_s1 = inlined_call_operand.vmem [shape: f32[4,64], index: 1, kind: input, shape index: {}]   ;;  %s1338_s2 = inlined_call_operand.vmem [shape: f32[64,4], index: 2, kind: input, shape index: {}]   ;;  %s1339_s3 = inlined_call_operand.hbm [shape: f32[2,64,256], index: 3, kind: output, shape index: {}]  }
   0x1   :  { %9 = vsyncpa [#allocation4], 0  ;;  %s1067_s12 = smov [#allocation2]   ;;  %s1019_s16 = scalar_lea.hbm %s1336_s0, 4096 }
   0x2   :  { %s15_s13 = sshll.u32 %s1067_s12, 4  ;;  %p1020_p0 = scmp.ne.s32.totalorder %s1336_s0, %s1019_s16  ;;  %s16_s13 = int_to_ptr.vmem [resolvable:$true] %s15_s13 }
   0x3   :  { %p1023_p1 = scmp.lt.u32.totalorder %s1019_s16, %s1336_s0 }
   0x5   :  { %p1025_p2 = pnand %p1023_p1, %p1020_p0 }
   0x7   :  { %1028 = shalt.err (!%p1025_p2)
}
   0x8   :  { %s1029_s21 = scalar_lea.vmem %s16_s13, 4096  ;;  %p1034_p4 = scmp.lt.s32.totalorder %s16_s13, %s16_s13 }
   0x9   :  { %p1030_p3 = scmp.ne.s32.totalorder %s16_s13, %s1029_s21  ;;  %p1035_p5 = scmp.lt.s32.totalorder %s1029_s21, %s1029_s21 }
   0xb   :  { %p1036_p6 = por %p1035_p5, %p1034_p4 }
   0xd   :  { %p1037_p7 = pnand %p1036_p6, %p1030_p3 }
   0xf   :  { %1040 = shalt.err (!%p1037_p7)
}
  0x10   :  { %s1068_s22 = smov 256   ;;  %s1069_s23 = smov 16  }
  0x11   :  { %21 = dma.hbm_to_vmem [thread:$0]  %s1336_s0, 4096, %s16_s13, [#allocation3], %s1068_s22, %s1068_s22, %s1069_s23  }
  0x12   :  { %1063 = dma.done.wait [#allocation3], 4096  }
  0x13   :  { %1064 = vsyncadd [#allocation3], 4294963200  ;;  %v1110_v0 = vld [vmem:[#allocation2 + $0x20] sm:$0xff]  ;;  %v1112_v1 = vld [vmem:[#allocation2 + $0x28] sm:$0xff]  ;;  %v1070_v24 = vmov 0.0|0.0   ;;  %vm1071_vm0 = vmmov 0  }
  0x14   :  { %v1114_v2 = vld [vmem:[#allocation2] sm:$0xff]  ;;  %v60_v3 = vadd.f32 %v1112_v1, %v1110_v0  ;;  %v1118_v4 = vld [vmem:[#allocation2 + $0x8] sm:$0xff]  ;;  %v1120_v5 = vld [vmem:[#allocation2 + $0x30] sm:$0xff]  ;;  %919 = vmatprep.subr.bf16.mxu0 %v1070_v24  ;;  %v1072_v25 = vmov 0.0   ;;  %vm86_vm1 = vcmask 523264   ;;  %vm161_vm2 = vcmask 31744  }
  0x15   :  { %v1122_v6 = vld [vmem:[#allocation2 + $0x38] sm:$0xff]  ;;  %v54_v7 = vadd.f32 %v1118_v4, %v1114_v2  ;;  %v1126_v8 = vld [vmem:[#allocation2 + $0x10] sm:$0xff]  ;;  %v1138_v14 = vld [vmem:[#allocation2 + $0x40] sm:$0xff]  ;;  %869 = vmatprep.mubr.msk.f32.mxu0 %vm1071_vm0, %v1072_v25  ;;  %vm186_vm3 = vcmask 1043456  }
  0x16   :  { %v1128_v9 = vld [vmem:[#allocation2 + $0x18] sm:$0xff]  ;;  %61 = vadd.xlane.f32.xlu1 %v60_v3  ;;  %v63_v10 = vadd.f32 %v1122_v6, %v1120_v5  ;;  %v1134_v12 = vld [vmem:[#allocation2 + $0x50] sm:$0xff]  ;;  %v1140_v15 = vld [vmem:[#allocation2 + $0x48] sm:$0xff] }
  0x17   :  { %55 = vadd.xlane.f32.xlu0 %v54_v7  ;;  %v57_v11 = vadd.f32 %v1128_v9, %v1126_v8  ;;  %v1136_v13 = vld [vmem:[#allocation2 + $0x58] sm:$0xff]  ;;  %v66_v17 = vadd.f32 %v1140_v15, %v1138_v14  ;;  %v1146_v18 = vld [vmem:[#allocation2 + $0x70] sm:$0xff]  ;;  %v1150_v20 = vld [vmem:[#allocation2 + $0x60] sm:$0xff] }
  0x18   :  { %v69_v16 = vadd.f32 %v1136_v13, %v1134_v12  ;;  %v1148_v19 = vld [vmem:[#allocation2 + $0x78] sm:$0xff]  ;;  %v1152_v21 = vld [vmem:[#allocation2 + $0x68] sm:$0xff]  ;;  %v1161_v26 = vld [vmem:[#allocation2 + $0x90] sm:$0xff] }
  0x19   :  { %v75_v22 = vadd.f32 %v1148_v19, %v1146_v18  ;;  %v72_v23 = vadd.f32 %v1152_v21, %v1150_v20  ;;  %v1163_v27 = vld [vmem:[#allocation2 + $0x98] sm:$0xff]  ;;  %v1165_v28 = vld [vmem:[#allocation2 + $0x80] sm:$0xff]  ;;  %v1169_v30 = vld [vmem:[#allocation2 + $0x88] sm:$0xff] }
  0x1a   :  { %64 = vadd.xlane.f32.xlu1 %v63_v10  ;;  %v435_v29 = vadd.f32 %v1163_v27, %v1161_v26  ;;  %v1171_v31 = vld [vmem:[#allocation2 + $0xb0] sm:$0xff]  ;;  %v1173_v32 = vld [vmem:[#allocation2 + $0xb8] sm:$0xff]  ;;  %v432_v33 = vadd.f32 %v1169_v30, %v1165_v28  ;;  %v1177_v34 = vld [vmem:[#allocation2 + $0xa0] sm:$0xff] }
  0x1b   :  { %58 = vadd.xlane.f32.xlu0 %v57_v11  ;;  %v1179_v35 = vld [vmem:[#allocation2 + $0xa8] sm:$0xff]  ;;  %v441_v36 = vadd.f32 %v1173_v32, %v1171_v31  ;;  %v1185_v38 = vld [vmem:[#allocation2 + $0xd0] sm:$0xff]  ;;  %v1187_v39 = vld [vmem:[#allocation2 + $0xd8] sm:$0xff] }
  0x1c   :  { %v438_v37 = vadd.f32 %v1179_v35, %v1177_v34  ;;  %v1189_v40 = vld [vmem:[#allocation2 + $0xc0] sm:$0xff]  ;;  %v1191_v41 = vld [vmem:[#allocation2 + $0xc8] sm:$0xff]  ;;  %v447_v42 = vadd.f32 %v1187_v39, %v1185_v38  ;;  %v1197_v44 = vld [vmem:[#allocation2 + $0xf0] sm:$0xff] }
  0x1d   :  { %v444_v43 = vadd.f32 %v1191_v41, %v1189_v40  ;;  %v1199_v45 = vld [vmem:[#allocation2 + $0xf8] sm:$0xff]  ;;  %v1201_v46 = vld [vmem:[#allocation2 + $0xe0] sm:$0xff]  ;;  %v1203_v47 = vld [vmem:[#allocation2 + $0xe8] sm:$0xff] }
  0x1e   :  { %70 = vadd.xlane.f32.xlu1 %v69_v16  ;;  %v453_v48 = vadd.f32 %v1199_v45, %v1197_v44  ;;  %v450_v49 = vadd.f32 %v1203_v47, %v1201_v46 }
  0x1f   :  { %67 = vadd.xlane.f32.xlu0 %v66_v17 }
  0x22   :  { %76 = vadd.xlane.f32.xlu1 %v75_v22  ;;  %v29_v22 = vld [vmem:[%s1337_s1] sm:$0xf] }
  0x23   :  { %73 = vadd.xlane.f32.xlu0 %v72_v23  ;;  %v30_v23 = vld [vmem:[%s1338_s2] sm:$0xff] }
  0x24   :  { %874 = vmatprep.mubr.msk.f32.mxu1 %vm161_vm2, %v30_v23 }
  0x26   :  { %436 = vadd.xlane.f32.xlu1 %v435_v29 }
  0x27   :  { %433 = vadd.xlane.f32.xlu0 %v432_v33 }
  0x2a   :  { %442 = vadd.xlane.f32.xlu1 %v441_v36 }
  0x2b   :  { %439 = vadd.xlane.f32.xlu0 %v438_v37 }
  0x2e   :  { %448 = vadd.xlane.f32.xlu1 %v447_v42 }
  0x2f   :  { %445 = vadd.xlane.f32.xlu0 %v444_v43 }
  0x32   :  { %454 = vadd.xlane.f32.xlu1 %v453_v48 }
  0x33   :  { %451 = vadd.xlane.f32.xlu0 %v450_v49 }
  0xa3   :  { %v62_v50 = vpop.xlane.xlu1 %61 }
  0xa4   :  { %v56_v51 = vpop.xlane.xlu0 %55  ;;  %v80_v56 = vmul.f32 0.00390625, %v62_v50 }
  0xa5   :  { %v78_v54 = vmul.f32 0.00390625, %v56_v51 }
  0xa7   :  { %v65_v52 = vpop.xlane.xlu1 %64 }
  0xa8   :  { %v59_v53 = vpop.xlane.xlu0 %58  ;;  %v81_v57 = vmul.f32 0.00390625, %v65_v52 }
  0xa9   :  { %v79_v55 = vmul.f32 0.00390625, %v59_v53 }
  0xaa   :  { %v923_v63 = vpack.c.bf16 %v81_v57, %v80_v56  ;;  %v1224_v56 = vld [vmem:[%s1338_s2 + $0x8] sm:$0xff]  ;;  %v1230_v57 = vld [vmem:[%s1338_s2 + $0x10] sm:$0xff] }
  0xab   :  { %v920_v58 = vpack.c.bf16 %v79_v55, %v78_v54  ;;  %v71_v59 = vpop.xlane.xlu1 %70 }
  0xac   :  { %v68_v60 = vpop.xlane.xlu0 %67  ;;  %v83_v61 = vmul.f32 0.00390625, %v71_v59 }
  0xad   :  { %921 = vmatpush3.bf16.msra.mxu0 %v920_v58  ;;  %v82_v62 = vmul.f32 0.00390625, %v68_v60 }
  0xae   :  { %922 = vmatprep.subr.bf16.mxu0 %v1070_v24 }
  0xaf   :  { %v77_v3 = vpop.xlane.xlu1 %76  ;;  %v926_v10 = vpack.c.bf16 %v83_v61, %v82_v62  ;;  %v1241_v61 = vld [vmem:[%s1338_s2 + $0x18] sm:$0xff]  ;;  %v1247_v62 = vld [vmem:[%s1338_s2 + $0x20] sm:$0xff] }
  0xb0   :  { %v74_v7 = vpop.xlane.xlu0 %73  ;;  %v85_v11 = vmul.f32 0.00390625, %v77_v3 }
  0xb1   :  { %924 = vmatpush3.bf16.msra.mxu0 %v923_v63  ;;  %v84_v16 = vmul.f32 0.00390625, %v74_v7 }
  0xb2   :  { %925 = vmatprep.subr.bf16.mxu0 %v1070_v24 }
  0xb3   :  { %v929_v17 = vpack.c.bf16 %v85_v11, %v84_v16  ;;  %v437_v29 = vpop.xlane.xlu1 %436  ;;  %v1256_v16 = vld [vmem:[%s1338_s2 + $0x28] sm:$0xff] }
  0xb4   :  { %v434_v33 = vpop.xlane.xlu0 %433  ;;  %v457_v42 = vmul.f32 0.00390625, %v437_v29  ;;  %v37_v29 = vld [vmem:[%s1338_s2 + $0x38] sm:$0xff] }
  0xb5   :  { %927 = vmatpush3.bf16.msra.mxu0 %v926_v10  ;;  %v456_v43 = vmul.f32 0.00390625, %v434_v33  ;;  %v1073_v33 = vmov 0  }
  0xb6   :  { %928 = vmatprep.subr.bf16.mxu0 %v1070_v24  ;;  %953 = vset.pattern.permute.xlu1 %v1073_v33 }
  0xb7   :  { %v443_v36 = vpop.xlane.xlu1 %442  ;;  %v932_v53 = vpack.c.bf16 %v457_v42, %v456_v43  ;;  %954 = vset.pattern.permute.xlu0 %v1073_v33 }
  0xb8   :  { %v440_v37 = vpop.xlane.xlu0 %439  ;;  %v459_v54 = vmul.f32 0.00390625, %v443_v36 }
  0xb9   :  { %930 = vmatpush3.bf16.msra.mxu0 %v929_v17  ;;  %v458_v55 = vmul.f32 0.00390625, %v440_v37  ;;  %v36_v17 = vld [vmem:[%s1338_s2 + $0x30] sm:$0xff]  ;;  %s1074_s2 = smov [#allocation5]  }
  0xba   :  { %s769_s15 = sshll.u32 %s1074_s2, 4  ;;  %s770_s15 = int_to_ptr.vmem [resolvable:$true] %s769_s15 }
  0xbb   :  { %v449_v49 = vpop.xlane.xlu1 %448  ;;  %v935_v58 = vpack.c.bf16 %v459_v54, %v458_v55  ;;  %s1041_s16 = scalar_lea.vmem %s770_s15, 4096  ;;  %p1046_p9 = scmp.lt.s32.totalorder %s770_s15, %s770_s15 }
  0xbc   :  { %870 = vmatmul.mubr.msk.f32.vlgmr.msra.gmra.mrb[0].mxu0 %vm86_vm1, %v29_v22  ;;  %v446_v52 = vpop.xlane.xlu0 %445  ;;  %v461_v59 = vmul.f32 0.00390625, %v449_v49  ;;  %p1042_p8 = scmp.ne.s32.totalorder %s770_s15, %s1041_s16  ;;  %p1047_p10 = scmp.lt.s32.totalorder %s1041_s16, %s1041_s16 }
  0xbd   :  { %907 = vmatprep.mubr.msk.f32.mxu0 %vm161_vm2, %v30_v23  ;;  %v460_v60 = vmul.f32 0.00390625, %v446_v52 }
  0xbe   :  { %p1048_p11 = por %p1047_p10, %p1046_p9 }
  0xbf   :  { %v455_v63 = vpop.xlane.xlu1 %454  ;;  %v938_v7 = vpack.c.bf16 %v461_v59, %v460_v60 }
  0xc0   :  { %v452_v3 = vpop.xlane.xlu0 %451  ;;  %v463_v10 = vmul.f32 0.00390625, %v455_v63  ;;  %p1049_p12 = pnand %p1048_p11, %p1042_p8 }
  0xc1   :  { %v462_v11 = vmul.f32 0.00390625, %v452_v3 }
  0xc3   :  { %v941_v23 = vpack.c.bf16 %v463_v10, %v462_v11 }
 0x18f   :  { %v156_v48 = vpop.f32.mrb[0].mxu0 }
 0x190   :  { %v160_v50 = vmax.f32 %v156_v48, 0.0  ;;  %v871_v51 = vpop.f32.mrb[1].mxu0 }
 0x192   :  { %872 = vmatprep.subr.msk.mxu1 %vm186_vm3, %v160_v50 }
 0x193   :  { %873 = vmatpush3.msk.msra.mxu1 %vm186_vm3, %v160_v50 }
 0x194   :  { %875 = vmatmul.mubr.msk.f32.vlgmr.msra.gmra.mrb[0].mxu1 %vm161_vm2, %v1224_v56  ;;  %931 = vmatprep.subr.bf16.mxu1 %v1070_v24 }
 0x195   :  { %933 = vmatpush3.bf16.msra.mxu1 %v932_v53  ;;  %877 = vmatprep.mubr.msk.f32.mxu1 %vm161_vm2, %v1230_v57 }
 0x196   :  { %934 = vmatprep.subr.bf16.mxu1 %v1070_v24 }
 0x198   :  { %878 = vmatmul.mubr.msk.f32.gmra.mrb[2].mxu1 %vm161_vm2, %v1241_v61 }
 0x199   :  { %936 = vmatpush3.bf16.msra.mxu1 %v935_v58  ;;  %880 = vmatprep.mubr.msk.f32.mxu1 %vm161_vm2, %v1247_v62 }
 0x19a   :  { %937 = vmatprep.subr.bf16.mxu1 %v1070_v24 }
 0x19c   :  { %881 = vmatmul.mubr.msk.f32.gmra.mrb[4].mxu1 %vm161_vm2, %v1256_v16 }
 0x19d   :  { %939 = vmatpush3.bf16.msra.mxu1 %v938_v7  ;;  %883 = vmatprep.mubr.msk.f32.mxu1 %vm161_vm2, %v36_v17 }
 0x19e   :  { %940 = vmatprep.subr.bf16.mxu1 %v1070_v24 }
 0x1a0   :  { %884 = vmatmul.mubr.msk.f32.gmra.mrb[6].mxu1 %vm161_vm2, %v37_v29 }
 0x1a1   :  { %942 = vmatpush3.bf16.msra.mxu1 %v941_v23  ;;  %902 = vmatprep.mubr.msk.f32.mxu1 %vm1071_vm0, %v1072_v25 }
 0x1a4   :  { %903 = vmatmul.mubr.msk.f32.vlgmr.msra.gmra.mrb[8].mxu1 %vm86_vm1, %v29_v22 }
 0x1a5   :  { %916 = vmatprep.mubr.msk.f32.mxu1 %vm161_vm2, %v36_v17 }
 0x267   :  { %v876_v36 = vpop.f32.mrb[0].mxu1 }
 0x268   :  { %v792_v37 = vmul.f32 -1.442695, %v876_v36  ;;  %v256_v42 = vpop.f32.mrb[1].mxu1 }
 0x269   :  { %v791_v43 = vmul.f32 -1.442695, %v256_v42 }
 0x26a   :  { %955 = vpow2.f32 %v792_v37 }
 0x26b   :  { %957 = vpow2.f32 %v791_v43  ;;  %v879_v24 = vpop.f32.mrb[2].mxu1 }
 0x26c   :  { %v794_v48 = vmul.f32 -1.442695, %v879_v24  ;;  %v266_v49 = vpop.f32.mrb[3].mxu1 }
 0x26d   :  { %v793_v50 = vmul.f32 -1.442695, %v266_v49 }
 0x26e   :  { %959 = vpow2.f32 %v794_v48 }
 0x26f   :  { %961 = vpow2.f32 %v793_v50  ;;  %v882_v25 = vpop.f32.mrb[4].mxu1 }
 0x270   :  { %v796_v51 = vmul.f32 -1.442695, %v882_v25  ;;  %v276_v22 = vpop.f32.mrb[5].mxu1 }
 0x271   :  { %v795_v52 = vmul.f32 -1.442695, %v276_v22 }
 0x272   :  { %963 = vpow2.f32 %v796_v51 }
 0x273   :  { %v885_v53 = vpop.f32.mrb[6].mxu1  ;;  %965 = vpow2.f32 %v795_v52 }
 0x274   :  { %v956_v54 = vpop.eup %955  ;;  %v286_v55 = vpop.f32.mrb[7].mxu1  ;;  %v798_v63 = vmul.f32 -1.442695, %v885_v53 }
 0x275   :  { %v958_v58 = vpop.eup %957  ;;  %v320_v59 = vadd.f32 1.0, %v956_v54  ;;  %v797_v33 = vmul.f32 -1.442695, %v286_v55 }
 0x276   :  { %v319_v60 = vadd.f32 1.0, %v958_v58 }
 0x277   :  { %967 = vrcp.f32 %v320_v59  ;;  %v530_v3 = vpop.f32.mrb[8].mxu1 }
 0x278   :  { %v960_v7 = vpop.eup %959  ;;  %969 = vrcp.f32 %v319_v60  ;;  %v534_v10 = vmax.f32 %v530_v3, 0.0  ;;  %v904_v11 = vpop.f32.mrb[9].mxu1 }
 0x279   :  { %v962_v17 = vpop.eup %961  ;;  %v322_v23 = vadd.f32 1.0, %v960_v7  ;;  %971 = vpow2.f32 %v798_v63 }
 0x27a   :  { %905 = vmatprep.subr.msk.mxu0 %vm186_vm3, %v534_v10  ;;  %943 = vmatprep.subr.msk.mxu1 %vm186_vm3, %v534_v10  ;;  %v321_v36 = vadd.f32 1.0, %v962_v17 }
 0x27b   :  { %973 = vrcp.f32 %v322_v23  ;;  %906 = vmatpush3.msk.msra.mxu0 %vm186_vm3, %v534_v10  ;;  %944 = vmatpush3.msk.msra.mxu1 %vm186_vm3, %v534_v10 }
 0x27c   :  { %v964_v37 = vpop.eup %963  ;;  %908 = vmatmul.mubr.msk.f32.vlgmr.msra.gmra.mrb[2].mxu0 %vm161_vm2, %v1224_v56  ;;  %917 = vmatmul.mubr.msk.f32.vlgmr.msra.gmra.mrb[10].mxu1 %vm161_vm2, %v37_v29  ;;  %975 = vpow2.f32 %v797_v33 }
 0x27d   :  { %910 = vmatprep.mubr.msk.f32.mxu0 %vm161_vm2, %v1230_v57  ;;  %977 = vrcp.f32 %v321_v36  ;;  %v324_v42 = vadd.f32 1.0, %v964_v37  ;;  %v966_v43 = vpop.eup %965 }
 0x27e   :  { %v323_v56 = vadd.f32 1.0, %v966_v43 }
 0x27f   :  { %979 = vrcp.f32 %v324_v42 }
 0x280   :  { %911 = vmatmul.mubr.msk.f32.gmra.mrb[4].mxu0 %vm161_vm2, %v1241_v61  ;;  %981 = vrcp.f32 %v323_v56 }
 0x281   :  { %v968_v24 = vpop.eup %967  ;;  %913 = vmatprep.mubr.msk.f32.mxu0 %vm161_vm2, %v1247_v62 }
 0x282   :  { %v970_v48 = vpop.eup %969  ;;  %350 = vperm.xlu1 %953, %v968_v24  }
 0x283   :  { %345 = vperm.xlu0 %954, %v970_v48   ;;  %v972_v29 = vpop.eup %971 }
 0x284   :  { %914 = vmatmul.mubr.msk.f32.gmra.mrb[6].mxu0 %vm161_vm2, %v1256_v16  ;;  %v326_v49 = vadd.f32 1.0, %v972_v29 }
 0x285   :  { %v974_v57 = vpop.eup %973 }
 0x286   :  { %360 = vperm.xlu1 %953, %v974_v57   ;;  %v976_v50 = vpop.eup %975  ;;  %983 = vrcp.f32 %v326_v49 }
 0x287   :  { %v978_v25 = vpop.eup %977  ;;  %v325_v61 = vadd.f32 1.0, %v976_v50 }
 0x289   :  { %v980_v51 = vpop.eup %979  ;;  %985 = vrcp.f32 %v325_v61 }
 0x28a   :  { %355 = vperm.xlu1 %953, %v978_v25   ;;  %v982_v62 = vpop.eup %981 }
 0x28e   :  { %370 = vperm.xlu1 %953, %v980_v51  }
 0x290   :  { %v984_v22 = vpop.eup %983 }
 0x292   :  { %365 = vperm.xlu1 %953, %v982_v62  }
 0x293   :  { %v986_v52 = vpop.eup %985 }
 0x296   :  { %380 = vperm.xlu1 %953, %v984_v22  }
 0x29a   :  { %375 = vperm.xlu1 %953, %v986_v52  }
 0x301   :  { %v351_v53 = vpop.permute.xlu1 %350 }
 0x302   :  { %v385_v16 = vmul.f32 %v351_v53, %v1126_v8  ;;  %v386_v54 = vmul.f32 %v351_v53, %v1128_v9  ;;  %v346_v55 = vpop.permute.xlu0 %345 }
 0x303   :  { %v383_v58 = vmul.f32 %v346_v55, %v1114_v2  ;;  %v384_v59 = vmul.f32 %v346_v55, %v1118_v4 }
 0x304   :  { %401 = vst [vmem:[#allocation5 + $0x10] sm:$0xff] %v385_v16  ;;  %402 = vst [vmem:[#allocation5 + $0x18] sm:$0xff] %v386_v54 }
 0x305   :  { %399 = vst [vmem:[#allocation5] sm:$0xff] %v383_v58  ;;  %400 = vst [vmem:[#allocation5 + $0x8] sm:$0xff] %v384_v59  ;;  %v361_v60 = vpop.permute.xlu1 %360 }
 0x306   :  { %v389_v63 = vmul.f32 %v361_v60, %v1120_v5  ;;  %v390_v3 = vmul.f32 %v361_v60, %v1122_v6 }
 0x308   :  { %405 = vst [vmem:[#allocation5 + $0x30] sm:$0xff] %v389_v63  ;;  %406 = vst [vmem:[#allocation5 + $0x38] sm:$0xff] %v390_v3 }
 0x309   :  { %v356_v7 = vpop.permute.xlu1 %355 }
 0x30a   :  { %v387_v8 = vmul.f32 %v356_v7, %v1110_v0  ;;  %v388_v9 = vmul.f32 %v356_v7, %v1112_v1 }
 0x30c   :  { %403 = vst [vmem:[#allocation5 + $0x20] sm:$0xff] %v387_v8  ;;  %404 = vst [vmem:[#allocation5 + $0x28] sm:$0xff] %v388_v9 }
 0x30d   :  { %v371_v2 = vpop.permute.xlu1 %370 }
 0x30e   :  { %v393_v4 = vmul.f32 %v371_v2, %v1134_v12  ;;  %v394_v10 = vmul.f32 %v371_v2, %v1136_v13 }
 0x310   :  { %409 = vst [vmem:[#allocation5 + $0x50] sm:$0xff] %v393_v4  ;;  %410 = vst [vmem:[#allocation5 + $0x58] sm:$0xff] %v394_v10 }
 0x311   :  { %v366_v11 = vpop.permute.xlu1 %365 }
 0x312   :  { %v391_v5 = vmul.f32 %v366_v11, %v1138_v14  ;;  %v392_v6 = vmul.f32 %v366_v11, %v1140_v15 }
 0x314   :  { %407 = vst [vmem:[#allocation5 + $0x40] sm:$0xff] %v391_v5  ;;  %408 = vst [vmem:[#allocation5 + $0x48] sm:$0xff] %v392_v6 }
 0x315   :  { %v381_v17 = vpop.permute.xlu1 %380 }
 0x316   :  { %v397_v0 = vmul.f32 %v381_v17, %v1146_v18  ;;  %v398_v1 = vmul.f32 %v381_v17, %v1148_v19 }
 0x318   :  { %413 = vst [vmem:[#allocation5 + $0x70] sm:$0xff] %v397_v0  ;;  %414 = vst [vmem:[#allocation5 + $0x78] sm:$0xff] %v398_v1 }
 0x319   :  { %v376_v23 = vpop.permute.xlu1 %375 }
 0x31a   :  { %v395_v12 = vmul.f32 %v376_v23, %v1150_v20  ;;  %v396_v13 = vmul.f32 %v376_v23, %v1152_v21 }
 0x31c   :  { %411 = vst [vmem:[#allocation5 + $0x60] sm:$0xff] %v395_v12  ;;  %412 = vst [vmem:[#allocation5 + $0x68] sm:$0xff] %v396_v13 }
 0x34f   :  { %v909_v33 = vpop.f32.mrb[2].mxu0  ;;  %v918_v14 = vpop.f32.mrb[10].mxu1 }
 0x350   :  { %v810_v36 = vmul.f32 -1.442695, %v909_v33  ;;  %v604_v15 = vpop.f32.mrb[3].mxu0  ;;  %v634_v37 = vpop.f32.mrb[11].mxu1  ;;  %v816_v24 = vmul.f32 -1.442695, %v918_v14 }
 0x351   :  { %v809_v42 = vmul.f32 -1.442695, %v604_v15  ;;  %v815_v56 = vmul.f32 -1.442695, %v634_v37 }
 0x352   :  { %987 = vpow2.f32 %v810_v36 }
 0x353   :  { %989 = vpow2.f32 %v809_v42  ;;  %v912_v18 = vpop.f32.mrb[4].mxu0 }
 0x354   :  { %v812_v43 = vmul.f32 -1.442695, %v912_v18  ;;  %v614_v19 = vpop.f32.mrb[5].mxu0 }
 0x355   :  { %v811_v48 = vmul.f32 -1.442695, %v614_v19 }
 0x356   :  { %991 = vpow2.f32 %v812_v43 }
 0x357   :  { %993 = vpow2.f32 %v811_v48  ;;  %v915_v20 = vpop.f32.mrb[6].mxu0 }
 0x358   :  { %v814_v21 = vmul.f32 -1.442695, %v915_v20  ;;  %v624_v29 = vpop.f32.mrb[7].mxu0  ;;  %995 = vpow2.f32 %v816_v24 }
 0x359   :  { %v813_v57 = vmul.f32 -1.442695, %v624_v29  ;;  %997 = vpow2.f32 %v815_v56 }
 0x35a   :  { %999 = vpow2.f32 %v814_v21 }
 0x35b   :  { %1001 = vpow2.f32 %v813_v57 }
 0x35c   :  { %v988_v49 = vpop.eup %987 }
 0x35d   :  { %v990_v50 = vpop.eup %989  ;;  %v668_v25 = vadd.f32 1.0, %v988_v49 }
 0x35e   :  { %v667_v61 = vadd.f32 1.0, %v990_v50 }
 0x35f   :  { %1003 = vrcp.f32 %v668_v25 }
 0x360   :  { %v992_v51 = vpop.eup %991  ;;  %1005 = vrcp.f32 %v667_v61 }
 0x361   :  { %v994_v62 = vpop.eup %993  ;;  %v670_v22 = vadd.f32 1.0, %v992_v51 }
 0x362   :  { %v996_v52 = vpop.eup %995  ;;  %v669_v53 = vadd.f32 1.0, %v994_v62 }
 0x363   :  { %v998_v16 = vpop.eup %997  ;;  %1007 = vrcp.f32 %v670_v22  ;;  %v674_v59 = vadd.f32 1.0, %v996_v52 }
 0x364   :  { %v1000_v54 = vpop.eup %999  ;;  %1009 = vrcp.f32 %v669_v53  ;;  %v673_v63 = vadd.f32 1.0, %v998_v16 }
 0x365   :  { %v1002_v55 = vpop.eup %1001  ;;  %v672_v58 = vadd.f32 1.0, %v1000_v54 }
 0x366   :  { %v671_v60 = vadd.f32 1.0, %v1002_v55 }
 0x367   :  { %1011 = vrcp.f32 %v672_v58 }
 0x368   :  { %1013 = vrcp.f32 %v671_v60 }
 0x369   :  { %v1004_v3 = vpop.eup %1003  ;;  %1015 = vrcp.f32 %v674_v59 }
 0x36a   :  { %v1006_v7 = vpop.eup %1005  ;;  %1017 = vrcp.f32 %v673_v63  ;;  %698 = vperm.xlu0 %954, %v1004_v3  }
 0x36b   :  { %693 = vperm.xlu1 %953, %v1006_v7  }
 0x36d   :  { %v1008_v8 = vpop.eup %1007 }
 0x36e   :  { %v1010_v9 = vpop.eup %1009  ;;  %708 = vperm.xlu0 %954, %v1008_v8  }
 0x36f   :  { %703 = vperm.xlu1 %953, %v1010_v9  }
 0x371   :  { %v1012_v2 = vpop.eup %1011 }
 0x372   :  { %v1014_v4 = vpop.eup %1013  ;;  %718 = vperm.xlu0 %954, %v1012_v2  }
 0x373   :  { %v1016_v10 = vpop.eup %1015  ;;  %713 = vperm.xlu1 %953, %v1014_v4  }
 0x374   :  { %v1018_v11 = vpop.eup %1017 }
 0x376   :  { %728 = vperm.xlu0 %954, %v1016_v10  }
 0x377   :  { %723 = vperm.xlu1 %953, %v1018_v11  }
 0x3e9   :  { %v699_v5 = vpop.permute.xlu0 %698 }
 0x3ea   :  { %v733_v6 = vmul.f32 %v699_v5, %v1161_v26  ;;  %v734_v17 = vmul.f32 %v699_v5, %v1163_v27  ;;  %v694_v0 = vpop.permute.xlu1 %693 }
 0x3eb   :  { %v731_v1 = vmul.f32 %v694_v0, %v1165_v28  ;;  %v732_v23 = vmul.f32 %v694_v0, %v1169_v30 }
 0x3ec   :  { %750 = vst [vmem:[#allocation5 + $0x90] sm:$0xff] %v733_v6  ;;  %751 = vst [vmem:[#allocation5 + $0x98] sm:$0xff] %v734_v17 }
 0x3ed   :  { %748 = vst [vmem:[#allocation5 + $0x80] sm:$0xff] %v731_v1  ;;  %749 = vst [vmem:[#allocation5 + $0x88] sm:$0xff] %v732_v23  ;;  %v709_v12 = vpop.permute.xlu0 %708 }
 0x3ee   :  { %v737_v13 = vmul.f32 %v709_v12, %v1171_v31  ;;  %v738_v33 = vmul.f32 %v709_v12, %v1173_v32  ;;  %v704_v14 = vpop.permute.xlu1 %703 }
 0x3ef   :  { %v735_v36 = vmul.f32 %v704_v14, %v1177_v34  ;;  %v736_v26 = vmul.f32 %v704_v14, %v1179_v35 }
 0x3f0   :  { %754 = vst [vmem:[#allocation5 + $0xb0] sm:$0xff] %v737_v13  ;;  %755 = vst [vmem:[#allocation5 + $0xb8] sm:$0xff] %v738_v33 }
 0x3f1   :  { %752 = vst [vmem:[#allocation5 + $0xa0] sm:$0xff] %v735_v36  ;;  %753 = vst [vmem:[#allocation5 + $0xa8] sm:$0xff] %v736_v26  ;;  %v719_v27 = vpop.permute.xlu0 %718 }
 0x3f2   :  { %v741_v28 = vmul.f32 %v719_v27, %v1185_v38  ;;  %v742_v30 = vmul.f32 %v719_v27, %v1187_v39  ;;  %v714_v15 = vpop.permute.xlu1 %713 }
 0x3f3   :  { %v739_v37 = vmul.f32 %v714_v15, %v1189_v40  ;;  %v740_v31 = vmul.f32 %v714_v15, %v1191_v41 }
 0x3f4   :  { %758 = vst [vmem:[#allocation5 + $0xd0] sm:$0xff] %v741_v28  ;;  %759 = vst [vmem:[#allocation5 + $0xd8] sm:$0xff] %v742_v30 }
 0x3f5   :  { %756 = vst [vmem:[#allocation5 + $0xc0] sm:$0xff] %v739_v37  ;;  %757 = vst [vmem:[#allocation5 + $0xc8] sm:$0xff] %v740_v31  ;;  %v729_v32 = vpop.permute.xlu0 %728 }
 0x3f6   :  { %v745_v34 = vmul.f32 %v729_v32, %v1197_v44  ;;  %v746_v35 = vmul.f32 %v729_v32, %v1199_v45  ;;  %v724_v42 = vpop.permute.xlu1 %723 }
 0x3f7   :  { %v743_v38 = vmul.f32 %v724_v42, %v1201_v46  ;;  %v744_v39 = vmul.f32 %v724_v42, %v1203_v47 }
 0x3f8   :  { %762 = vst [vmem:[#allocation5 + $0xf0] sm:$0xff] %v745_v34  ;;  %763 = vst [vmem:[#allocation5 + $0xf8] sm:$0xff] %v746_v35 }
 0x3f9   :  { %760 = vst [vmem:[#allocation5 + $0xe0] sm:$0xff] %v743_v38  ;;  %761 = vst [vmem:[#allocation5 + $0xe8] sm:$0xff] %v744_v39 }
 0x3fa   :  { %1052 = shalt.err (!%p1049_p12)
}
 0x3fb   :  { %s1053_s19 = scalar_lea.hbm %s1339_s3, 4096 }
 0x3fc   :  { %p1054_p13 = scmp.ne.s32.totalorder %s1339_s3, %s1053_s19  ;;  %p1057_p0 = scmp.lt.u32.totalorder %s1053_s19, %s1339_s3 }
 0x3fe   :  { %p1059_p1 = pnand %p1057_p0, %p1054_p13 }
 0x400   :  { %1062 = shalt.err (!%p1059_p1)
}
 0x401   :  { %775 = dma.vmem_to_hbm [thread:$0]  %s770_s15, 4096, %s1339_s3, [#allocation4], %s1068_s22, %s1068_s22, %s1069_s23  }
 0x402   :  { %1065 = dma.done.wait [#allocation4], 4096  }
 0x403   :  { %1066 = vsyncadd [#allocation4], 4294963200 }
 0x404   :  { %779 = vsyncpa [#allocation3], 1 }
 0x405   :  { %780 = vsyncpa [#allocation4], 1 }

</bundles_post_ra>
